<compile_context>
chip_gen: v7x
topology: tpu7x:2x2x1
jax: 0.10.0
libtpu: 0.0.40
codegen_flags: <defaults>
</compile_context>

<pallas_src>
import functools

import jax
import jax.numpy as jnp
import numpy as np
from jax.experimental import pallas as pl
from jax.experimental.pallas import tpu as pltpu

_INT32_MAX = int(jnp.iinfo(jnp.int32).max)
_LANE = 128


def _round_up(x: int, m: int) -> int:
    return ((x + m - 1) // m) * m


def _sublane_multiple(dtype) -> int:
    # sublane packing: 4-byte -> 8, 2-byte -> 16, 1-byte -> 32
    return {4: 8, 2: 16, 1: 32}.get(jnp.dtype(dtype).itemsize, 8)


def _lowest(dtype):
    dtype = jnp.dtype(dtype)
    if jnp.issubdtype(dtype, jnp.floating):
        return float("-inf")
    return int(jnp.iinfo(dtype).min)


def _vmem_budget_and_cap():
    """(tile budget, vmem_limit ceiling), derived from the chip's per-core VMEM."""
    cap = 64 * 1024 * 1024  # conservative fallback == v7x per-core VMEM
    try:
        info = pltpu.get_tpu_info()
        cap = int(getattr(info, "vmem_capacity_bytes", cap)) or cap
    except Exception:
        pass
    # ~48 MiB budget / 96 MiB ceiling on 128-MiB parts (v5e/v6e);
    # ~24 MiB budget / 48 MiB ceiling on v7x (64 MiB per TC).
    return (cap * 3) // 8, (cap * 3) // 4


# ----------------------------------------------------------------------------- 
# Kernels
# -----------------------------------------------------------------------------

def _argmax_single_kernel(x_ref, o_ref, *, check_nan):
    """Single vocab tile per row block: write argmax directly, no scratch."""
    x = x_ref[...]
    col = jax.lax.broadcasted_iota(jnp.int32, x.shape, 1)
    m = jnp.max(x, axis=-1, keepdims=True)
    is_top = x == m
    if check_nan:
        # torch.argmax treats NaN as the maximum -> pick the first NaN if present.
        is_top = is_top | jnp.isnan(x)
    o_ref[...] = jnp.min(jnp.where(is_top, col, _INT32_MAX),
                         axis=-1, keepdims=True).astype(jnp.int32)


def _tile_scan(x, col, low, check_nan, valid):
    """(max, first-argmax) of one vocab tile; `valid` masks padded tail columns."""
    xm = x if valid is None else jnp.where(valid, x, low)
    m = jnp.max(xm, axis=-1, keepdims=True)
    is_top = xm == m
    if check_nan:
        nan = jnp.isnan(x)
        if valid is not None:
            nan = nan & valid
        is_top = is_top | nan
    idx = jnp.min(jnp.where(is_top, col, _INT32_MAX),
                  axis=-1, keepdims=True).astype(jnp.int32)
    return m, idx


def _argmax_multi_kernel(x_ref, o_ref, maxv_ref, idx_ref, *,
                         v_total, block_v, mask_tail, check_nan, low_value):
    """Running (max, argmax) over lane-tiled vocab; first-occurrence tie-break."""
    k = pl.program_id(1)

    @pl.when(k == 0)
    def _init():
        maxv_ref[...] = jnp.full_like(maxv_ref, low_value)
        idx_ref[...] = jnp.zeros_like(idx_ref)

    x = x_ref[...]
    low = jnp.asarray(low_value, x.dtype)
    col = jax.lax.broadcasted_iota(jnp.int32, x.shape, 1) + k * block_v

    if mask_tail:
        # Only the last vocab tile contains padded (garbage) columns; mask only there.
        m, idx = jax.lax.cond(
            k == pl.num_programs(1) - 1,
            lambda xx, cc: _tile_scan(xx, cc, low, check_nan, cc < v_total),
            lambda xx, cc: _tile_scan(xx, cc, low, check_nan, None),
            x, col)
    else:
        m, idx = _tile_scan(x, col, low, check_nan, None)

    prev_m = maxv_ref[...]
    prev_i = idx_ref[...]
    if check_nan:
        # Strict '>' keeps the first occurrence; a NaN max wins unless an earlier
        # tile already produced a NaN (first-NaN semantics across tiles).
        cur_wins = (jnp.isnan(m) | (m > prev_m)) & jnp.logical_not(jnp.isnan(prev_m))
    else:
        cur_wins = m > prev_m
    maxv_ref[...] = jnp.where(cur_wins, m, prev_m)
    idx_ref[...] = jnp.where(cur_wins, idx, prev_i)

    @pl.when(k == pl.num_programs(1) - 1)
    def _finalize():
        o_ref[...] = idx_ref[...]


# -----------------------------------------------------------------------------
# Tiling
# -----------------------------------------------------------------------------

def _choose_tiles(rows, vocab, dtype, budget):
    itemsize = jnp.dtype(dtype).itemsize
    sub = _sublane_multiple(dtype)
    rows_pad = _round_up(rows, sub)
    vpad = _round_up(vocab, _LANE)

    # Path A: whole vocab per row block (single vocab tile).  Per-row VMEM cost:
    # double-buffered input row + double-buffered int32 output (lane-padded to 128).
    per_row = 2 * vpad * itemsize + 2 * _LANE * 4
    block_rows = (budget // per_row) // sub * sub
    if block_rows >= sub:
        block_rows = min(block_rows, rows_pad)
        # Split the row axis across >=2 blocks only when the input is big enough
        # that the extra grid step (~0.35 us) is noise; lets v7x's two TensorCores
        # share the work, costs nothing measurable on single-TC v5e/v6e.
        if rows * vocab * itemsize >= (2 << 20) and rows_pad >= 2 * sub:
            block_rows = min(block_rows, _round_up(pl.cdiv(rows, 2), sub))
        return block_rows, vocab

    # Path B: vocab too large for even one sublane-group of full-vocab rows ->
    # lane-tile the vocab axis.  Target 128-256 row blocks and spend the rest of
    # the budget on the vocab tile (multiple of 128).
    fixed_per_row = 2 * _LANE * 4 + _LANE * itemsize + _LANE * 4  # out dbuf + scratch
    for cand in (256, 128, 64, 32, 16, 8):
        br = min(_round_up(cand, sub), rows_pad)
        avail = budget - br * fixed_per_row
        bv = 0
        if avail > 0:
            bv = (avail // (2 * br * itemsize)) // _LANE * _LANE
        if bv >= _LANE:
            return br, min(bv, vpad)
    return sub, _LANE  # absolute minimum (pathologically tiny caller budget)


# -----------------------------------------------------------------------------
# Wrapper (== LogitsBucketting.forward)
# -----------------------------------------------------------------------------

def logits_bucketting(logits: jax.Array, target=None, *,
                      vmem_budget_bytes: int | None = None,
                      nan_as_max: bool = True) -> jax.Array:
    """Equivalent of LogitsBucketting.forward(input, target).

    logits: (..., V) array; `target` is unused (as in the PyTorch module).
    Returns int32 array of shape (prod(leading dims),): argmax over the last axis.
    """
    del target  # unused by the module's forward
    *lead, vocab = logits.shape
    rows = 1
    for d in lead:
        rows *= int(d)
    x2d = logits.reshape(rows, vocab)

    if vocab < _LANE:
        # Lane-underfilled vregs + 128-lane output padding: XLA's native reduce wins.
        return jnp.argmax(x2d, axis=-1).astype(jnp.int32)

    budget, limit_cap = _vmem_budget_and_cap()
    if vmem_budget_bytes is not None:
        budget = int(vmem_budget_bytes)

    itemsize = jnp.dtype(logits.dtype).itemsize
    is_float = bool(jnp.issubdtype(logits.dtype, jnp.floating))
    check_nan = is_float and nan_as_max

    block_rows, block_v = _choose_tiles(rows, vocab, logits.dtype, budget)
    single_vtile = block_v >= vocab
    if single_vtile:
        block_v = vocab

    n_row_blocks = pl.cdiv(rows, block_rows)
    n_v_blocks = 1 if single_vtile else pl.cdiv(vocab, block_v)

    # vmem_limit derived from the tiles actually chosen (+25% headroom), capped by
    # a generation-aware ceiling.
    in_tile = block_rows * _round_up(block_v, _LANE) * itemsize
    out_tile = block_rows * _LANE * 4
    needed = 2 * in_tile + 2 * out_tile
    if not single_vtile:
        needed += block_rows * _LANE * (itemsize + 4)   # running max + argmax scratch
    vmem_limit = int(min(limit_cap, max(needed + needed // 4 + (1 << 20), 16 << 20)))

    cost = pl.CostEstimate(flops=2 * rows * vocab, transcendentals=0,
                           bytes_accessed=rows * vocab * itemsize + rows * 4)

    if single_vtile:
        kernel = functools.partial(_argmax_single_kernel, check_nan=check_nan)
        out = pl.pallas_call(
            kernel,
            out_shape=jax.ShapeDtypeStruct((rows, 1), jnp.int32),
            grid=(n_row_blocks,),
            in_specs=[pl.BlockSpec((block_rows, vocab), lambda i: (i, 0))],
            out_specs=pl.BlockSpec((block_rows, 1), lambda i: (i, 0)),
            scratch_shapes=(),
            compiler_params=pltpu.CompilerParams(
                dimension_semantics=("parallel",),
                vmem_limit_bytes=vmem_limit),
            cost_estimate=cost,
        )(x2d)
    else:
        kernel = functools.partial(
            _argmax_multi_kernel,
            v_total=vocab, block_v=block_v, mask_tail=(vocab % block_v) != 0,
            check_nan=check_nan, low_value=_lowest(logits.dtype))
        out = pl.pallas_call(
            kernel,
            out_shape=jax.ShapeDtypeStruct((rows, 1), jnp.int32),
            grid=(n_row_blocks, n_v_blocks),
            in_specs=[pl.BlockSpec((block_rows, block_v), lambda i, k: (i, k))],
            out_specs=pl.BlockSpec((block_rows, 1), lambda i, k: (i, 0)),
            scratch_shapes=[
                pltpu.VMEM((block_rows, 1), logits.dtype),   # running max
                pltpu.VMEM((block_rows, 1), jnp.int32),      # running argmax
            ],
            compiler_params=pltpu.CompilerParams(
                dimension_semantics=("parallel", "arbitrary"),
                vmem_limit_bytes=vmem_limit),
            cost_estimate=cost,
        )(x2d)

    return out.reshape(rows)  # flatten, already int32


# -----------------------------------------------------------------------------
# Self-test
# -----------------------------------------------------------------------------

if __name__ == "__main__":
    key = jax.random.PRNGKey(0)
    ks = jax.random.split(key, 6)

    def np_argmax_ref(x):
        # numpy argmax == torch.argmax semantics: NaN as max, first occurrence wins.
        return np.argmax(np.asarray(jnp.asarray(x, jnp.float32)), axis=-1).astype(np.int32)

    # Case 1: main path -- single vocab tile, f32, MIDI-sized vocab.
    batch, seq, vocab = 2, 8, 384
    logits = jax.random.normal(ks[0], (batch, seq, vocab), dtype=jnp.float32)
    target = jax.random.randint(ks[1], (batch, seq), 0, vocab, dtype=jnp.int32)  # unused
    out = jax.block_until_ready(logits_bucketting(logits, target))
    assert out.shape == (batch * seq,) and out.dtype == jnp.int32
    assert np.array_equal(np.asarray(out), np_argmax_ref(logits).reshape(-1))

    # Case 2: lane-tiled (huge-vocab) path forced via a tiny budget, bf16, V % 128 != 0.
    vocab2 = 200
    logits2 = jax.random.normal(ks[2], (batch, seq, vocab2), dtype=jnp.bfloat16)
    out2 = jax.block_until_ready(logits_bucketting(logits2, None, vmem_budget_bytes=2048))
    assert out2.shape == (batch * seq,) and out2.dtype == jnp.int32
    assert np.array_equal(np.asarray(out2), np_argmax_ref(logits2).reshape(-1))

    # Case 3: torch.argmax NaN / tie / -inf parity on the single-tile path (V=200, f32).
    base = jax.random.uniform(ks[3], (6, 200), dtype=jnp.float32, minval=-1.0, maxval=1.0)
    x3 = base
    x3 = x3.at[0, 50].set(100.0).at[0, 130].set(jnp.nan)   # NaN beats larger finite value
    x3 = x3.at[1, 5].set(jnp.nan).at[1, 130].set(jnp.nan)  # first NaN wins
    x3 = x3.at[2, 20].set(50.0).at[2, 100].set(50.0)       # tie -> first occurrence
    x3 = x3.at[3, 199].set(75.0)                           # max in the last column
    x3 = x3.at[4, :].set(-jnp.inf)                         # all -inf -> index 0
    out3 = jax.block_until_ready(logits_bucketting(x3, None))
    exp3 = np.array([130, 5, 20, 199, 0,
                     int(np.argmax(np.asarray(base)[5]))], dtype=np.int32)
    assert np.array_equal(np.asarray(out3), exp3)

    # Case 4: NaN + tail-masked last vocab tile on the lane-tiled path (V=200, f32).
    base4 = jax.random.uniform(ks[4], (4, 200), dtype=jnp.float32, minval=-1.0, maxval=1.0)
    x4 = base4
    x4 = x4.at[0, 10].set(100.0).at[0, 150].set(jnp.nan)   # NaN inside the masked tile wins
    x4 = x4.at[1, 5].set(jnp.nan)                          # NaN in the first tile wins
    x4 = x4.at[2, 199].set(60.0)                           # max in the last valid column
    out4 = jax.block_until_ready(logits_bucketting(x4, None, vmem_budget_bytes=4096))
    exp4 = np.array([150, 5, 199,
                     int(np.argmax(np.asarray(base4)[3]))], dtype=np.int32)
    assert np.array_equal(np.asarray(out4), exp4)

    # Case 5: tiny-vocab fallback (V < 128) dispatches to jnp.argmax.
    vocab5 = 32
    logits5 = jax.random.normal(ks[5], (batch, seq, vocab5), dtype=jnp.float32)
    out5 = jax.block_until_ready(logits_bucketting(logits5, None))
    assert out5.shape == (batch * seq,) and out5.dtype == jnp.int32
    assert np.array_equal(np.asarray(out5), np_argmax_ref(logits5).reshape(-1))

    print("KERNEL_OK")
</pallas_src>

<mosaic_0001>
module attributes {stable_mosaic.version = 11 : i64} {
  func.func @_argmax_single_kernel(%arg0: i32, %arg1: memref<16x384xf32, #tpu.memory_space<vmem>>, %arg2: memref<16x1xi32, #tpu.memory_space<vmem>>) attributes {dimension_semantics = [#tpu.dimension_semantics<parallel>], iteration_bounds = array<i64: 1>, scalar_prefetch = 0 : i64, scratch_operands = 0 : i64, tpu.core_type = #tpu.core_type<tc>, window_params = [{transform_indices = @transform_0, window_bounds = array<i64: 16, 384>}, {transform_indices = @transform_1, window_bounds = array<i64: 16, 1>}]} {
    %c0 = arith.constant 0 : index
    %c0_0 = arith.constant 0 : index
    %0 = vector.load %arg1[%c0, %c0_0] : memref<16x384xf32, #tpu.memory_space<vmem>>, vector<16x384xf32>
    %1 = tpu.iota {dimensions = array<i32: 1>} : vector<16x384xi32>
    %cst = arith.constant dense<0xFF800000> : vector<16xf32>
    %2 = vector.multi_reduction <maximumf>, %0, %cst [1] : vector<16x384xf32> to vector<16xf32>
    %3 = vector.shape_cast %2 : vector<16xf32> to vector<16x1xf32>
    %4 = vector.broadcast %3 : vector<16x1xf32> to vector<16x384xf32>
    %5 = arith.cmpf oeq, %0, %4 : vector<16x384xf32>
    %6 = arith.cmpf one, %0, %0 : vector<16x384xf32>
    %7 = arith.ori %5, %6 : vector<16x384xi1>
    %c2147483647_i32 = arith.constant 2147483647 : i32
    %8 = vector.broadcast %c2147483647_i32 : i32 to vector<16x384xi32>
    %9 = arith.select %7, %1, %8 : vector<16x384xi1>, vector<16x384xi32>
    %cst_1 = arith.constant dense<2147483647> : vector<16xi32>
    %10 = vector.multi_reduction <minsi>, %9, %cst_1 [1] : vector<16x384xi32> to vector<16xi32>
    %11 = vector.shape_cast %10 : vector<16xi32> to vector<16x1xi32>
    %c0_2 = arith.constant 0 : index
    %c0_3 = arith.constant 0 : index
    %12 = vector.load %arg2[%c0_2, %c0_3] : memref<16x1xi32, #tpu.memory_space<vmem>>, vector<16x1xi32>
    tpu.vector_store %arg2[%c0_2, %c0_3], %11 {strides = array<i32>} : memref<16x1xi32, #tpu.memory_space<vmem>>, vector<16x1xi32>,
    return
  }
  func.func @transform_0(%arg0: i32) -> (i32, i32) {
    %c0_i32 = arith.constant 0 : i32
    %c0_i32_0 = arith.constant 0 : i32
    return %arg0, %c0_i32 : i32, i32
  }
  func.func @transform_1(%arg0: i32) -> (i32, i32) {
    %c0_i32 = arith.constant 0 : i32
    %c0_i32_0 = arith.constant 0 : i32
    return %arg0, %c0_i32 : i32, i32
  }
}

</mosaic_0001>

<bundles_post_ra>
// kernel: tpu_custom_call.1
= control target key start
LH: loop header
LB: loop body
LE: loop exit
PB: predicated region body
PF: predicated region fallthrough
CT: control target
= control target key end

     0   :  { %6 = vsyncpa [#allocation3], 0  ;;  %s135_s6 = smov [#allocation2]   ;;  %s172_s0 = inlined_call_operand.hbm [shape: f32[16,384], index: 0, kind: input, shape index: {}]   ;;  %s173_s1 = inlined_call_operand.vmem [shape: s32[16,1], index: 1, kind: output, shape index: {}]  }
   0x1   :  { %s12_s7 = sshll.u32 %s135_s6, 4  ;;  %s111_s10 = scalar_lea.hbm %s172_s0, 768  ;;  %s13_s7 = int_to_ptr.vmem [resolvable:$true] %s12_s7 }
   0x2   :  { %p112_p0 = scmp.ne.s32.totalorder %s172_s0, %s111_s10  ;;  %p115_p1 = scmp.lt.u32.totalorder %s111_s10, %s172_s0 }
   0x4   :  { %p117_p2 = pnand %p115_p1, %p112_p0 }
   0x6   :  { %120 = shalt.err (!%p117_p2)
}
   0x7   :  { %s121_s15 = scalar_lea.vmem %s13_s7, 768  ;;  %p126_p4 = scmp.lt.s32.totalorder %s13_s7, %s13_s7 }
   0x8   :  { %p122_p3 = scmp.ne.s32.totalorder %s13_s7, %s121_s15  ;;  %p127_p5 = scmp.lt.s32.totalorder %s121_s15, %s121_s15 }
   0xa   :  { %p128_p6 = por %p127_p5, %p126_p4 }
   0xc   :  { %p129_p7 = pnand %p128_p6, %p122_p3 }
   0xe   :  { %132 = shalt.err (!%p129_p7)
}
   0xf   :  { %s136_s16 = smov 384   ;;  %s137_s17 = smov 24  }
  0x10   :  { %18 = dma.hbm_to_vmem [thread:$0]  %s172_s0, 768, %s13_s7, [#allocation3], %s136_s16, %s136_s16, %s137_s17  }
  0x11   :  { %133 = dma.done.wait [#allocation3], 768  }
  0x12   :  { %134 = vsyncadd [#allocation3], 4294966528  ;;  %v22_v0 = vld [vmem:[#allocation2] sm:$0xff]  ;;  %v23_v1 = vld [vmem:[#allocation2 + $0x8] sm:$0xff]  ;;  %v28_v10 = vlaneseq }
  0x13   :  { %v24_v2 = vld [vmem:[#allocation2 + $0x10] sm:$0xff]  ;;  %v25_v4 = vld [vmem:[#allocation2 + $0x18] sm:$0xff]  ;;  %v27_v5 = vld [vmem:[#allocation2 + $0x28] sm:$0xff]  ;;  %vm46_vm0 = vcmp.ne.f32.partialorder %v22_v0, %v22_v0  ;;  %vm47_vm1 = vcmp.ne.f32.partialorder %v23_v1, %v23_v1 }
  0x14   :  { %v32_v3 = vmax.f32 %v22_v0, %v24_v2  ;;  %v26_v6 = vld [vmem:[#allocation2 + $0x20] sm:$0xff]  ;;  %v36_v7 = vmax.f32 %v25_v4, %v27_v5  ;;  %v29_v11 = vand.u32 127, %v28_v10  ;;  %vm48_vm2 = vcmp.ne.f32.partialorder %v24_v2, %v24_v2 }
  0x15   :  { %vm49_vm8 = vcmp.ne.f32.partialorder %v25_v4, %v25_v4  ;;  %vm50_vm10 = vcmp.ne.f32.partialorder %v26_v6, %v26_v6  ;;  %vm51_vm11 = vcmp.ne.f32.partialorder %v27_v5, %v27_v5 }
  0x16   :  { %v33_v8 = vmax.f32 %v32_v3, %v23_v1  ;;  %v37_v9 = vmax.f32 %v36_v7, %v26_v6  ;;  %v31_v12 = vadd.s32 256, %v29_v11  ;;  %v30_v16 = vadd.s32 128, %v29_v11 }
  0x18   :  { %34 = vmax.xlane.f32.xlu0 %v33_v8 }
  0x1c   :  { %38 = vmax.xlane.f32.xlu0 %v37_v9 }
  0xa5   :  { %v35_v13 = vpop.xlane.xlu0 %34 }
  0xa6   :  { %vm40_vm3 = vcmp.eq.f32.partialorder %v22_v0, %v35_v13  ;;  %vm41_vm4 = vcmp.eq.f32.partialorder %v23_v1, %v35_v13  ;;  %vm42_vm5 = vcmp.eq.f32.partialorder %v24_v2, %v35_v13 }
  0xa7   :  { %vm52_vm6 = vmor %vm40_vm3, %vm46_vm0 }
  0xa8   :  { %vm160_vm7 = vmor %vm41_vm4, %vm47_vm1  ;;  %v58_v15 = vsel %vm52_vm6, %v29_v11, 2147483647 }
  0xa9   :  { %vm54_vm9 = vmor %vm42_vm5, %vm48_vm2  ;;  %v39_v17 = vpop.xlane.xlu0 %38  ;;  %v59_v20 = vsel %vm160_vm7, %v30_v16, 2147483647 }
  0xaa   :  { %v60_v18 = vsel %vm54_vm9, %v31_v12, 2147483647  ;;  %vm43_vm12 = vcmp.eq.f32.partialorder %v25_v4, %v39_v17  ;;  %vm44_vm13 = vcmp.eq.f32.partialorder %v26_v6, %v39_v17  ;;  %vm45_vm14 = vcmp.eq.f32.partialorder %v27_v5, %v39_v17 }
  0xab   :  { %vm64_vm15 = vcmp.lt.s32.totalorder %v58_v15, %v60_v18  ;;  %vm55_vm0 = vmor %vm43_vm12, %vm49_vm8  ;;  %vm100_vm8 = vcmask 7168  }
  0xac   :  { %vm56_vm3 = vmor %vm44_vm13, %vm50_vm10  ;;  %v61_v19 = vsel %vm55_vm0, %v29_v11, 2147483647  ;;  %v65_v21 = vsel %vm64_vm15, %v58_v15, %v60_v18 }
  0xad   :  { %vm57_vm1 = vmor %vm45_vm14, %vm51_vm11  ;;  %vm66_vm4 = vcmp.lt.s32.totalorder %v65_v21, %v59_v20  ;;  %v62_v25 = vsel %vm56_vm3, %v30_v16, 2147483647 }
  0xae   :  { %v63_v22 = vsel %vm57_vm1, %v31_v12, 2147483647  ;;  %v67_v23 = vsel %vm66_vm4, %v65_v21, %v59_v20 }
  0xaf   :  { %vm82_vm2 = vcmp.lt.s32.totalorder %v61_v19, %v63_v22  ;;  %v69_v24 = vshra.s32 %v67_v23, 16  ;;  %v68_v31 = vand.u32 65535, %v67_v23 }
  0xb0   :  { %v83_v26 = vsel %vm82_vm2, %v61_v19, %v63_v22 }
  0xb1   :  { %v71_v27 = vcvt.s32.f32 %v69_v24  ;;  %vm84_vm5 = vcmp.lt.s32.totalorder %v83_v26, %v62_v25  ;;  %v70_v33 = vcvt.s32.f32 %v68_v31 }
  0xb2   :  { %v85_v28 = vsel %vm84_vm5, %v83_v26, %v62_v25 }
  0xb3   :  { %72 = vmin.xlane.f32.xlu1 %v71_v27  ;;  %v87_v29 = vshra.s32 %v85_v28, 16  ;;  %v86_v34 = vand.u32 65535, %v85_v28 }
  0xb5   :  { %v89_v30 = vcvt.s32.f32 %v87_v29  ;;  %v88_v37 = vcvt.s32.f32 %v86_v34 }
  0xb7   :  { %90 = vmin.xlane.f32.xlu1 %v89_v30 }
 0x140   :  { %v73_v32 = vpop.xlane.xlu1 %72 }
 0x141   :  { %vm74_vm6 = vcmp.eq.f32.partialorder %v71_v27, %v73_v32  ;;  %v79_v39 = vcvt.f32.s32 %v73_v32 }
 0x142   :  { %v75_v35 = vsel %vm74_vm6, %v70_v33, inf }
 0x143   :  { %76 = vmin.xlane.f32.xlu0 %v75_v35  ;;  %v80_v41 = vshll.u32 %v79_v39, 16 }
 0x144   :  { %v91_v36 = vpop.xlane.xlu1 %90 }
 0x145   :  { %vm92_vm7 = vcmp.eq.f32.partialorder %v89_v30, %v91_v36  ;;  %v97_v42 = vcvt.f32.s32 %v91_v36 }
 0x146   :  { %v93_v38 = vsel %vm92_vm7, %v88_v37, inf }
 0x147   :  { %94 = vmin.xlane.f32.xlu1 %v93_v38  ;;  %v98_v46 = vshll.u32 %v97_v42, 16 }
 0x1d0   :  { %v77_v40 = vpop.xlane.xlu0 %76 }
 0x1d1   :  { %v78_v43 = vcvt.f32.s32 %v77_v40 }
 0x1d3   :  { %v81_v44 = vadd.s32 %v80_v41, %v78_v43 }
 0x1d4   :  { %v95_v45 = vpop.xlane.xlu1 %94 }
 0x1d5   :  { %101 = vst.msk [vmem:[%s173_s1] sm:$0xff] %vm100_vm8, %v81_v44  ;;  %v96_v47 = vcvt.f32.s32 %v95_v45 }
 0x1d7   :  { %v99_v48 = vadd.s32 %v98_v46, %v96_v47 }
 0x1d9   :  { %102 = vst.msk [vmem:[%s173_s1 + $0x8] sm:$0xff] %vm100_vm8, %v99_v48 }
 0x1da   :  { %107 = vsyncpa [#allocation3], 1 }

</bundles_post_ra>
